<compile_context>
chip_gen: v7x
topology: tpu7x:2x2x1
jax: 0.10.0
libtpu: 0.0.40
codegen_flags: <defaults>
</compile_context>

<pallas_src>
import jax
import jax.numpy as jnp
import numpy as np
from jax.experimental import pallas as pl
from jax.experimental.pallas import tpu as pltpu

_LN_EPS = 1e-5
_LANE = 128            # TPU lane width
_MAX_BATCH_TILE = 256  # rows per grid step for large batches (multiple of 8)


def _round_up(x, m):
    return ((x + m - 1) // m) * m


# ----------------------------- fused kernel -------------------------------- #
def _make_actor_kernel(num_hidden):
    """Builds the fused actor kernel for a static number of hidden blocks."""

    def kernel(std_ref, obs_ref, w0_ref, b0_ref, g_ref, beta_ref, *rest):
        # rest = [w_1, b_1, ..., w_num_hidden, b_num_hidden,
        #         w_out, b_out, mu_ref, std_out_ref]
        hidden_refs = rest[: 2 * num_hidden]
        w_out_ref, b_out_ref, mu_ref, std_out_ref = rest[2 * num_hidden:]

        def _dot(x, w_ref):
            # Cast activations to the weight dtype (f32 or bf16); always
            # accumulate in f32 on the MXU.
            return jnp.dot(x.astype(w_ref.dtype), w_ref[...],
                           preferred_element_type=jnp.float32)

        # ---- first block: Linear + LayerNorm + Tanh (all f32 math) ---------
        h = _dot(obs_ref[...], w0_ref) + b0_ref[...]
        mean = jnp.mean(h, axis=-1, keepdims=True)
        centered = h - mean
        var = jnp.mean(centered * centered, axis=-1, keepdims=True)
        h = centered * jax.lax.rsqrt(var + _LN_EPS)
        h = jnp.tanh(h * g_ref[...] + beta_ref[...])

        # ---- hidden blocks: Linear + ReLU (statically unrolled) -------------
        for i in range(num_hidden):
            w_ref = hidden_refs[2 * i]
            b_ref = hidden_refs[2 * i + 1]
            h = jnp.maximum(_dot(h, w_ref) + b_ref[...], 0.0)

        # ---- output: Linear + actor tanh, plus std written in-kernel --------
        mu = jnp.tanh(_dot(h, w_out_ref) + b_out_ref[...])
        mu_ref[...] = mu
        std_out_ref[...] = jnp.full_like(mu, std_ref[0])

    return kernel


# ----------------------------- actor module -------------------------------- #
def init_actor_params(key, observation_length, action_length,
                      hidden_dimension, hidden_layers):
    """Deterministic init mimicking torch.nn.Linear default (uniform +-1/sqrt(fan_in))."""
    if hidden_layers < 1:
        # TODO(synk): hidden_layers == 0 (single Linear trunk) not implemented.
        raise NotImplementedError("hidden_layers must be >= 1")
    params = {}

    def linear(key, fan_in, fan_out):
        kw, kb = jax.random.split(key)
        bound = 1.0 / jnp.sqrt(fan_in)
        w = jax.random.uniform(kw, (fan_in, fan_out), jnp.float32, -bound, bound)
        b = jax.random.uniform(kb, (1, fan_out), jnp.float32, -bound, bound)
        return w, b

    keys = jax.random.split(key, hidden_layers + 1)
    # first layer: Linear(obs, hidden) + LayerNorm(hidden) + Tanh
    params["w0"], params["b0"] = linear(keys[0], observation_length, hidden_dimension)
    params["ln_gamma"] = jnp.ones((1, hidden_dimension), jnp.float32)
    params["ln_beta"] = jnp.zeros((1, hidden_dimension), jnp.float32)
    # hidden layers: Linear(hidden, hidden) + ReLU
    params["hidden"] = []
    for i in range(hidden_layers - 1):
        params["hidden"].append(linear(keys[1 + i], hidden_dimension, hidden_dimension))
    # output layer: Linear(hidden, action)
    params["w_out"], params["b_out"] = linear(keys[-1], hidden_dimension, action_length)
    return params


def actor_forward(params, observation, std, *, weights_dtype=jnp.float32):
    """Fused forward pass. Returns (mu, std) — the TruncatedNormal parameters.

    weights_dtype=jnp.bfloat16 halves weight HBM traffic / doubles MXU rate on
    v6e/v7x (accumulation stays f32); keep jnp.float32 on v5e.
    """
    if observation.shape[-1] != params["w0"].shape[0]:
        raise ValueError(
            f"Input shape {observation.shape} does not match input dimension "
            f"{params['w0'].shape[0]}")

    batch, obs_dim = observation.shape
    action_dim = params["w_out"].shape[1]
    num_hidden = len(params["hidden"])

    # --- lane-dense output: pad the action dim to a multiple of 128 ----------
    out_pad = _round_up(max(action_dim, _LANE), _LANE)
    w_out = jnp.pad(params["w_out"], ((0, 0), (0, out_pad - action_dim)))
    b_out = jnp.pad(params["b_out"], ((0, 0), (0, out_pad - action_dim)))

    # --- batch tiling: one block for small batches, 256-row tiles otherwise --
    if batch <= _MAX_BATCH_TILE:
        tb = _round_up(batch, 8)
    else:
        tb = _MAX_BATCH_TILE
    batch_pad = _round_up(batch, tb)
    obs = observation
    if batch_pad != batch:
        obs = jnp.pad(obs, ((0, batch_pad - batch), (0, 0)))
    num_blocks = batch_pad // tb

    # --- optional bf16 weights (f32 accumulation inside the kernel) ----------
    w0 = params["w0"].astype(weights_dtype)
    hidden_args = []
    for (w, b) in params["hidden"]:
        hidden_args += [w.astype(weights_dtype), b]
    w_out = w_out.astype(weights_dtype)

    def full_spec(shape):
        # Weights/biases stay fully resident in VMEM across all grid steps.
        return pl.BlockSpec(shape, lambda i: (0,) * len(shape))

    in_specs = [
        pl.BlockSpec(memory_space=pltpu.MemorySpace.SMEM),       # std scalar
        pl.BlockSpec((tb, obs_dim), lambda i: (i, 0)),           # obs tile
        full_spec(w0.shape), full_spec(params["b0"].shape),
        full_spec(params["ln_gamma"].shape), full_spec(params["ln_beta"].shape),
    ]
    for a in hidden_args:
        in_specs.append(full_spec(a.shape))
    in_specs += [full_spec(w_out.shape), full_spec(b_out.shape)]

    out_specs = [
        pl.BlockSpec((tb, out_pad), lambda i: (i, 0)),
        pl.BlockSpec((tb, out_pad), lambda i: (i, 0)),
    ]
    out_shape = [
        jax.ShapeDtypeStruct((batch_pad, out_pad), jnp.float32),
        jax.ShapeDtypeStruct((batch_pad, out_pad), jnp.float32),
    ]

    std_arr = jnp.full((1,), std, jnp.float32)

    mu_pad, std_pad = pl.pallas_call(
        _make_actor_kernel(num_hidden),
        grid=(num_blocks,),
        in_specs=in_specs,
        out_specs=out_specs,
        out_shape=out_shape,
        compiler_params=pltpu.CompilerParams(
            dimension_semantics=("parallel",),
            vmem_limit_bytes=64 << 20),
    )(std_arr, obs, w0, params["b0"], params["ln_gamma"], params["ln_beta"],
      *hidden_args, w_out, b_out)

    # TODO(synk): torch.distributions TruncatedNormal has no Pallas equivalent;
    # we return its parameters (mu, std) instead.
    return mu_pad[:batch, :action_dim], std_pad[:batch, :action_dim]


# ----------------------------- pure-JAX reference --------------------------- #
def _actor_forward_ref(params, observation, std):
    h = observation @ params["w0"] + params["b0"]
    mean = jnp.mean(h, axis=-1, keepdims=True)
    var = jnp.mean((h - mean) ** 2, axis=-1, keepdims=True)
    h = (h - mean) * jax.lax.rsqrt(var + _LN_EPS)
    h = jnp.tanh(h * params["ln_gamma"] + params["ln_beta"])
    for (w, b) in params["hidden"]:
        h = jnp.maximum(h @ w + b, 0.0)
    mu = jnp.tanh(h @ params["w_out"] + params["b_out"])
    return mu, jnp.full_like(mu, std)


# ----------------------------- main ---------------------------------------- #
if __name__ == "__main__":
    batch = 8
    observation_length = 32
    action_length = 8
    hidden_dimension = 32
    hidden_layers = 2
    std = 0.2

    key = jax.random.PRNGKey(0)
    k_params, k_obs = jax.random.split(key)
    params = init_actor_params(k_params, observation_length, action_length,
                               hidden_dimension, hidden_layers)
    observation = jax.random.normal(k_obs, (batch, observation_length), jnp.float32)

    fwd = jax.jit(actor_forward)
    mu, std_arr = fwd(params, observation, std)
    jax.block_until_ready((mu, std_arr))

    mu_ref, std_ref = _actor_forward_ref(params, observation, std)

    assert mu.shape == (batch, action_length)
    assert std_arr.shape == (batch, action_length)
    assert bool(jnp.all(jnp.isfinite(mu)))
    np.testing.assert_allclose(np.asarray(mu), np.asarray(mu_ref),
                               rtol=1e-4, atol=1e-4)
    np.testing.assert_allclose(np.asarray(std_arr), np.asarray(std_ref),
                               rtol=1e-6, atol=1e-6)
    print("KERNEL_OK")
</pallas_src>

<mosaic_0001>
module attributes {stable_mosaic.version = 11 : i64} {
  func.func @kernel(%arg0: i32, %arg1: memref<1xf32, #tpu.memory_space<smem>>, %arg2: memref<8x32xf32, #tpu.memory_space<vmem>>, %arg3: memref<32x32xf32, #tpu.memory_space<vmem>>, %arg4: memref<1x32xf32, #tpu.memory_space<vmem>>, %arg5: memref<1x32xf32, #tpu.memory_space<vmem>>, %arg6: memref<1x32xf32, #tpu.memory_space<vmem>>, %arg7: memref<32x32xf32, #tpu.memory_space<vmem>>, %arg8: memref<1x32xf32, #tpu.memory_space<vmem>>, %arg9: memref<32x128xf32, #tpu.memory_space<vmem>>, %arg10: memref<1x128xf32, #tpu.memory_space<vmem>>, %arg11: memref<8x128xf32, #tpu.memory_space<vmem>>, %arg12: memref<8x128xf32, #tpu.memory_space<vmem>>) attributes {dimension_semantics = [#tpu.dimension_semantics<parallel>], iteration_bounds = array<i64: 1>, scalar_prefetch = 0 : i64, scratch_operands = 0 : i64, tpu.core_type = #tpu.core_type<tc>, window_params = [{transform_indices = @transform_0, window_bounds = array<i64: 1>}, {transform_indices = @transform_1, window_bounds = array<i64: 8, 32>}, {pipeline_mode = #tpu.pipeline_mode<synchronous>, transform_indices = @transform_2, window_bounds = array<i64: 32, 32>}, {pipeline_mode = #tpu.pipeline_mode<synchronous>, transform_indices = @transform_3, window_bounds = array<i64: 1, 32>}, {pipeline_mode = #tpu.pipeline_mode<synchronous>, transform_indices = @transform_4, window_bounds = array<i64: 1, 32>}, {pipeline_mode = #tpu.pipeline_mode<synchronous>, transform_indices = @transform_5, window_bounds = array<i64: 1, 32>}, {pipeline_mode = #tpu.pipeline_mode<synchronous>, transform_indices = @transform_6, window_bounds = array<i64: 32, 32>}, {pipeline_mode = #tpu.pipeline_mode<synchronous>, transform_indices = @transform_7, window_bounds = array<i64: 1, 32>}, {pipeline_mode = #tpu.pipeline_mode<synchronous>, transform_indices = @transform_8, window_bounds = array<i64: 32, 128>}, {pipeline_mode = #tpu.pipeline_mode<synchronous>, transform_indices = @transform_9, window_bounds = array<i64: 1, 128>}, {transform_indices = @transform_10, window_bounds = array<i64: 8, 128>}, {transform_indices = @transform_11, window_bounds = array<i64: 8, 128>}]} {
    %c0 = arith.constant 0 : index
    %c0_0 = arith.constant 0 : index
    %0 = vector.load %arg2[%c0, %c0_0] : memref<8x32xf32, #tpu.memory_space<vmem>>, vector<8x32xf32>
    %c0_1 = arith.constant 0 : index
    %c0_2 = arith.constant 0 : index
    %1 = vector.load %arg3[%c0_1, %c0_2] : memref<32x32xf32, #tpu.memory_space<vmem>>, vector<32x32xf32>
    %cst = arith.constant dense<0.000000e+00> : vector<8x32xf32>
    %2 = tpu.matmul %0, %1, %cst {dimension_numbers = #tpu.dot_dimension_numbers<[1], [0], [0], [1], [0, 0, 1, 1], [], []>} : vector<8x32xf32>, vector<32x32xf32>, vector<8x32xf32> -> vector<8x32xf32>
    %c0_3 = arith.constant 0 : index
    %c0_4 = arith.constant 0 : index
    %3 = vector.load %arg4[%c0_3, %c0_4] : memref<1x32xf32, #tpu.memory_space<vmem>>, vector<1x32xf32>
    %4 = vector.broadcast %3 : vector<1x32xf32> to vector<8x32xf32>
    %5 = arith.addf %2, %4 : vector<8x32xf32>
    %cst_5 = arith.constant dense<0.000000e+00> : vector<8xf32>
    %6 = vector.multi_reduction <add>, %5, %cst_5 [1] : vector<8x32xf32> to vector<8xf32>
    %7 = vector.shape_cast %6 : vector<8xf32> to vector<8x1xf32>
    %cst_6 = arith.constant 3.200000e+01 : f32
    %8 = vector.broadcast %cst_6 : f32 to vector<8x1xf32>
    %9 = arith.divf %7, %8 : vector<8x1xf32>
    %10 = vector.broadcast %9 : vector<8x1xf32> to vector<8x32xf32>
    %11 = arith.subf %5, %10 : vector<8x32xf32>
    %12 = arith.mulf %11, %11 : vector<8x32xf32>
    %cst_7 = arith.constant dense<0.000000e+00> : vector<8xf32>
    %13 = vector.multi_reduction <add>, %12, %cst_7 [1] : vector<8x32xf32> to vector<8xf32>
    %14 = vector.shape_cast %13 : vector<8xf32> to vector<8x1xf32>
    %cst_8 = arith.constant 3.200000e+01 : f32
    %15 = vector.broadcast %cst_8 : f32 to vector<8x1xf32>
    %16 = arith.divf %14, %15 : vector<8x1xf32>
    %cst_9 = arith.constant 9.99999974E-6 : f32
    %17 = vector.broadcast %cst_9 : f32 to vector<8x1xf32>
    %18 = arith.addf %16, %17 : vector<8x1xf32>
    %19 = math.rsqrt %18 : vector<8x1xf32>
    %20 = vector.broadcast %19 : vector<8x1xf32> to vector<8x32xf32>
    %21 = arith.mulf %11, %20 : vector<8x32xf32>
    %c0_10 = arith.constant 0 : index
    %c0_11 = arith.constant 0 : index
    %22 = vector.load %arg5[%c0_10, %c0_11] : memref<1x32xf32, #tpu.memory_space<vmem>>, vector<1x32xf32>
    %23 = vector.broadcast %22 : vector<1x32xf32> to vector<8x32xf32>
    %24 = arith.mulf %21, %23 : vector<8x32xf32>
    %c0_12 = arith.constant 0 : index
    %c0_13 = arith.constant 0 : index
    %25 = vector.load %arg6[%c0_12, %c0_13] : memref<1x32xf32, #tpu.memory_space<vmem>>, vector<1x32xf32>
    %26 = vector.broadcast %25 : vector<1x32xf32> to vector<8x32xf32>
    %27 = arith.addf %24, %26 : vector<8x32xf32>
    %28 = math.tanh %27 : vector<8x32xf32>
    %c0_14 = arith.constant 0 : index
    %c0_15 = arith.constant 0 : index
    %29 = vector.load %arg7[%c0_14, %c0_15] : memref<32x32xf32, #tpu.memory_space<vmem>>, vector<32x32xf32>
    %cst_16 = arith.constant dense<0.000000e+00> : vector<8x32xf32>
    %30 = tpu.matmul %28, %29, %cst_16 {dimension_numbers = #tpu.dot_dimension_numbers<[1], [0], [0], [1], [0, 0, 1, 1], [], []>} : vector<8x32xf32>, vector<32x32xf32>, vector<8x32xf32> -> vector<8x32xf32>
    %c0_17 = arith.constant 0 : index
    %c0_18 = arith.constant 0 : index
    %31 = vector.load %arg8[%c0_17, %c0_18] : memref<1x32xf32, #tpu.memory_space<vmem>>, vector<1x32xf32>
    %32 = vector.broadcast %31 : vector<1x32xf32> to vector<8x32xf32>
    %33 = arith.addf %30, %32 : vector<8x32xf32>
    %cst_19 = arith.constant 0.000000e+00 : f32
    %34 = vector.broadcast %cst_19 : f32 to vector<8x32xf32>
    %35 = arith.maximumf %33, %34 : vector<8x32xf32>
    %c0_20 = arith.constant 0 : index
    %c0_21 = arith.constant 0 : index
    %36 = vector.load %arg9[%c0_20, %c0_21] : memref<32x128xf32, #tpu.memory_space<vmem>>, vector<32x128xf32>
    %cst_22 = arith.constant dense<0.000000e+00> : vector<8x128xf32>
    %37 = tpu.matmul %35, %36, %cst_22 {dimension_numbers = #tpu.dot_dimension_numbers<[1], [0], [0], [1], [0, 0, 1, 1], [], []>} : vector<8x32xf32>, vector<32x128xf32>, vector<8x128xf32> -> vector<8x128xf32>
    %c0_23 = arith.constant 0 : index
    %c0_24 = arith.constant 0 : index
    %38 = vector.load %arg10[%c0_23, %c0_24] : memref<1x128xf32, #tpu.memory_space<vmem>>, vector<1x128xf32>
    %39 = vector.broadcast %38 : vector<1x128xf32> to vector<8x128xf32>
    %40 = arith.addf %37, %39 : vector<8x128xf32>
    %41 = math.tanh %40 : vector<8x128xf32>
    %c0_25 = arith.constant 0 : index
    %c0_26 = arith.constant 0 : index
    %42 = vector.load %arg11[%c0_25, %c0_26] : memref<8x128xf32, #tpu.memory_space<vmem>>, vector<8x128xf32>
    tpu.vector_store %arg11[%c0_25, %c0_26], %41 {strides = array<i32>} : memref<8x128xf32, #tpu.memory_space<vmem>>, vector<8x128xf32>,
    %c0_27 = arith.constant 0 : index
    %43 = memref.load %arg1[%c0_27] : memref<1xf32, #tpu.memory_space<smem>>
    %44 = vector.broadcast %43 : f32 to vector<8x128xf32>
    %c0_28 = arith.constant 0 : index
    %c0_29 = arith.constant 0 : index
    %45 = vector.load %arg12[%c0_28, %c0_29] : memref<8x128xf32, #tpu.memory_space<vmem>>, vector<8x128xf32>
    tpu.vector_store %arg12[%c0_28, %c0_29], %44 {strides = array<i32>} : memref<8x128xf32, #tpu.memory_space<vmem>>, vector<8x128xf32>,
    return
  }
  func.func @transform_0(%arg0: i32) -> i32 {
    %c0_i32 = arith.constant 0 : i32
    %c0_i32_0 = arith.constant 0 : i32
    return %c0_i32 : i32
  }
  func.func @transform_1(%arg0: i32) -> (i32, i32) {
    %c0_i32 = arith.constant 0 : i32
    %c0_i32_0 = arith.constant 0 : i32
    return %arg0, %c0_i32 : i32, i32
  }
  func.func @transform_2(%arg0: i32) -> (i32, i32) {
    %c0_i32 = arith.constant 0 : i32
    %c0_i32_0 = arith.constant 0 : i32
    %c0_i32_1 = arith.constant 0 : i32
    return %c0_i32, %c0_i32_0 : i32, i32
  }
  func.func @transform_3(%arg0: i32) -> (i32, i32) {
    %c0_i32 = arith.constant 0 : i32
    %c0_i32_0 = arith.constant 0 : i32
    %c0_i32_1 = arith.constant 0 : i32
    return %c0_i32, %c0_i32_0 : i32, i32
  }
  func.func @transform_4(%arg0: i32) -> (i32, i32) {
    %c0_i32 = arith.constant 0 : i32
    %c0_i32_0 = arith.constant 0 : i32
    %c0_i32_1 = arith.constant 0 : i32
    return %c0_i32, %c0_i32_0 : i32, i32
  }
  func.func @transform_5(%arg0: i32) -> (i32, i32) {
    %c0_i32 = arith.constant 0 : i32
    %c0_i32_0 = arith.constant 0 : i32
    %c0_i32_1 = arith.constant 0 : i32
    return %c0_i32, %c0_i32_0 : i32, i32
  }
  func.func @transform_6(%arg0: i32) -> (i32, i32) {
    %c0_i32 = arith.constant 0 : i32
    %c0_i32_0 = arith.constant 0 : i32
    %c0_i32_1 = arith.constant 0 : i32
    return %c0_i32, %c0_i32_0 : i32, i32
  }
  func.func @transform_7(%arg0: i32) -> (i32, i32) {
    %c0_i32 = arith.constant 0 : i32
    %c0_i32_0 = arith.constant 0 : i32
    %c0_i32_1 = arith.constant 0 : i32
    return %c0_i32, %c0_i32_0 : i32, i32
  }
  func.func @transform_8(%arg0: i32) -> (i32, i32) {
    %c0_i32 = arith.constant 0 : i32
    %c0_i32_0 = arith.constant 0 : i32
    %c0_i32_1 = arith.constant 0 : i32
    return %c0_i32, %c0_i32_0 : i32, i32
  }
  func.func @transform_9(%arg0: i32) -> (i32, i32) {
    %c0_i32 = arith.constant 0 : i32
    %c0_i32_0 = arith.constant 0 : i32
    %c0_i32_1 = arith.constant 0 : i32
    return %c0_i32, %c0_i32_0 : i32, i32
  }
  func.func @transform_10(%arg0: i32) -> (i32, i32) {
    %c0_i32 = arith.constant 0 : i32
    %c0_i32_0 = arith.constant 0 : i32
    return %arg0, %c0_i32 : i32, i32
  }
  func.func @transform_11(%arg0: i32) -> (i32, i32) {
    %c0_i32 = arith.constant 0 : i32
    %c0_i32_0 = arith.constant 0 : i32
    return %arg0, %c0_i32 : i32, i32
  }
}

</mosaic_0001>

<bundles_post_ra>
// kernel: actor_forward.1
= control target key start
LH: loop header
LB: loop body
LE: loop exit
PB: predicated region body
PF: predicated region fallthrough
CT: control target
= control target key end

     0   :  { %18 = vsyncpa [#allocation4], 0  ;;  %s1054_s0 = inlined_call_operand.<no memory space> [shape: f32[1], index: 0, kind: input, shape index: {}]   ;;  %s1055_s1 = inlined_call_operand.hbm [shape: f32[8,32], index: 1, kind: input, shape index: {}]   ;;  %s1056_s2 = inlined_call_operand.hbm [shape: f32[32,32], index: 2, kind: input, shape index: {}]   ;;  %s1057_s3 = inlined_call_operand.hbm [shape: f32[1,32], index: 3, kind: input, shape index: {}]   ;;  %s1058_s4 = inlined_call_operand.hbm [shape: f32[1,32], index: 4, kind: input, shape index: {}]   ;;  %s1059_s5 = inlined_call_operand.hbm [shape: f32[1,32], index: 5, kind: input, shape index: {}]   ;;  %s1060_s6 = inlined_call_operand.hbm [shape: f32[32,32], index: 6, kind: input, shape index: {}]   ;;  %s1061_s7 = inlined_call_operand.hbm [shape: f32[1,32], index: 7, kind: input, shape index: {}]   ;;  %s1062_s8 = inlined_call_operand.hbm [shape: f32[32,128], index: 8, kind: input, shape index: {}]   ;;  %s1063_s9 = inlined_call_operand.hbm [shape: f32[1,128], index: 9, kind: input, shape index: {}]   ;;  %s1064_s10 = inlined_call_operand.hbm [shape: f32[8,128], index: 10, kind: output, shape index: {0}]   ;;  %s1065_s11 = inlined_call_operand.hbm [shape: f32[8,128], index: 11, kind: output, shape index: {1}]  }
   0x1   :  { %19 = vsyncpa [#allocation7], 0 }
   0x2   :  { %20 = vsyncpa [#allocation10], 0 }
   0x3   :  { %21 = vsyncpa [#allocation13], 0 }
   0x4   :  { %22 = vsyncpa [#allocation16], 0 }
   0x5   :  { %23 = vsyncpa [#allocation5], 0 }
   0x6   :  { %24 = vsyncpa [#allocation20], 0  ;;  %s826_s17 = smov [#allocation6]   ;;  %s570_s21 = scalar_lea.hbm %s1056_s2, 512 }
   0x7   :  { %s42_s18 = sshll.u32 %s826_s17, 4  ;;  %p571_p0 = scmp.ne.s32.totalorder %s1056_s2, %s570_s21  ;;  %s43_s18 = int_to_ptr.vmem [resolvable:$true] %s42_s18 }
   0x8   :  { %p574_p1 = scmp.lt.u32.totalorder %s570_s21, %s1056_s2 }
   0xa   :  { %p576_p2 = pnand %p574_p1, %p571_p0 }
   0xc   :  { %579 = shalt.err (!%p576_p2)
}
   0xd   :  { %s580_s26 = scalar_lea.vmem %s43_s18, 512  ;;  %p585_p4 = scmp.lt.s32.totalorder %s43_s18, %s43_s18 }
   0xe   :  { %p581_p3 = scmp.ne.s32.totalorder %s43_s18, %s580_s26  ;;  %p586_p5 = scmp.lt.s32.totalorder %s580_s26, %s580_s26 }
  0x10   :  { %p587_p6 = por %p586_p5, %p585_p4 }
  0x12   :  { %p588_p7 = pnand %p587_p6, %p581_p3 }
  0x14   :  { %591 = shalt.err (!%p588_p7)
}
  0x15   :  { %s827_s27 = smov 128   ;;  %s828_s28 = smov 8  }
  0x16   :  { %48 = dma.hbm_to_vmem [thread:$0]  %s1056_s2, 512, %s43_s18, [#allocation7], %s827_s27, %s827_s27, %s828_s28  }
  0x17   :  { %s829_s12 = smov [#allocation9]   ;;  %s830_s14 = smov [#allocation12]  }
  0x18   :  { %s65_s13 = sshll.u32 %s829_s12, 4  ;;  %s84_s15 = sshll.u32 %s830_s14, 4  ;;  %s66_s13 = int_to_ptr.vmem [resolvable:$true] %s65_s13  ;;  %s85_s15 = int_to_ptr.vmem [resolvable:$true] %s84_s15 }
  0x19   :  { %s592_s19 = scalar_lea.hbm %s1058_s4, 16 }
  0x1a   :  { %p593_p8 = scmp.ne.s32.totalorder %s1058_s4, %s592_s19  ;;  %p596_p9 = scmp.lt.u32.totalorder %s592_s19, %s1058_s4 }
  0x1c   :  { %p598_p10 = pnand %p596_p9, %p593_p8 }
  0x1e   :  { %601 = shalt.err (!%p598_p10)
}
  0x1f   :  { %s602_s2 = scalar_lea.vmem %s66_s13, 16  ;;  %s606_s18 = scalar_lea.vmem %s66_s13, 32 }
  0x20   :  { %p603_p11 = scmp.ne.s32.totalorder %s66_s13, %s602_s2  ;;  %p607_p12 = scmp.lt.s32.totalorder %s66_s13, %s66_s13 }
  0x21   :  { %p608_p13 = scmp.lt.s32.totalorder %s606_s18, %s602_s2 }
  0x23   :  { %p609_p0 = por %p608_p13, %p607_p12 }
  0x25   :  { %p610_p1 = pnand %p609_p0, %p603_p11 }
  0x27   :  { %613 = shalt.err (!%p610_p1)
}
  0x28   :  { %68 = dma.hbm_to_vmem [thread:$0]  %s1058_s4, 16, %s66_s13, [#allocation10]  }
  0x29   :  { %s614_s30 = scalar_lea.hbm %s1060_s6, 512 }
  0x2a   :  { %p615_p2 = scmp.ne.s32.totalorder %s1060_s6, %s614_s30  ;;  %p618_p3 = scmp.lt.u32.totalorder %s614_s30, %s1060_s6 }
  0x2c   :  { %p620_p4 = pnand %p618_p3, %p615_p2 }
  0x2e   :  { %623 = shalt.err (!%p620_p4)
}
  0x2f   :  { %s624_s19 = scalar_lea.vmem %s85_s15, 512  ;;  %p629_p6 = scmp.lt.s32.totalorder %s85_s15, %s85_s15 }
  0x30   :  { %p625_p5 = scmp.ne.s32.totalorder %s85_s15, %s624_s19  ;;  %p630_p7 = scmp.lt.s32.totalorder %s624_s19, %s624_s19 }
  0x32   :  { %p631_p8 = por %p630_p7, %p629_p6 }
  0x34   :  { %p632_p9 = pnand %p631_p8, %p625_p5 }
  0x36   :  { %635 = shalt.err (!%p632_p9)
}
  0x37   :  { %90 = dma.hbm_to_vmem [thread:$0]  %s1060_s6, 512, %s85_s15, [#allocation13], %s827_s27, %s827_s27, %s828_s28  }
  0x38   :  { %s831_s20 = smov [#allocation15]   ;;  %s832_s22 = smov [#allocation3]  }
  0x39   :  { %s106_s21 = sshll.u32 %s831_s20, 4  ;;  %s33_s23 = sshll.u32 %s832_s22, 4  ;;  %s107_s21 = int_to_ptr.vmem [resolvable:$true] %s106_s21  ;;  %s34_s23 = int_to_ptr.vmem [resolvable:$true] %s33_s23 }
  0x3a   :  { %s636_s24 = scalar_lea.hbm %s1062_s8, 512 }
  0x3b   :  { %p637_p10 = scmp.ne.s32.totalorder %s1062_s8, %s636_s24  ;;  %p640_p11 = scmp.lt.u32.totalorder %s636_s24, %s1062_s8 }
  0x3d   :  { %p642_p12 = pnand %p640_p11, %p637_p10 }
  0x3f   :  { %645 = shalt.err (!%p642_p12)
}
  0x40   :  { %s646_s6 = scalar_lea.vmem %s107_s21, 512  ;;  %p651_p0 = scmp.lt.s32.totalorder %s107_s21, %s107_s21 }
  0x41   :  { %p647_p13 = scmp.ne.s32.totalorder %s107_s21, %s646_s6  ;;  %p652_p1 = scmp.lt.s32.totalorder %s646_s6, %s646_s6 }
  0x43   :  { %p653_p2 = por %p652_p1, %p651_p0 }
  0x45   :  { %p654_p3 = pnand %p653_p2, %p647_p13 }
  0x47   :  { %657 = shalt.err (!%p654_p3)
}
  0x48   :  { %112 = dma.hbm_to_vmem [thread:$0]  %s1062_s8, 512, %s107_s21, [#allocation16], %s827_s27, %s827_s27, %s828_s28  }
  0x49   :  { %s658_s17 = scalar_lea.hbm %s1055_s1, 128 }
  0x4a   :  { %p659_p4 = scmp.ne.s32.totalorder %s1055_s1, %s658_s17  ;;  %p662_p5 = scmp.lt.u32.totalorder %s658_s17, %s1055_s1 }
  0x4c   :  { %p664_p6 = pnand %p662_p5, %p659_p4 }
  0x4e   :  { %667 = shalt.err (!%p664_p6)
}
  0x4f   :  { %s668_s22 = scalar_lea.vmem %s34_s23, 128  ;;  %p673_p8 = scmp.lt.s32.totalorder %s34_s23, %s34_s23 }
  0x50   :  { %p669_p7 = scmp.ne.s32.totalorder %s34_s23, %s668_s22  ;;  %p674_p9 = scmp.lt.s32.totalorder %s668_s22, %s668_s22 }
  0x52   :  { %p675_p10 = por %p674_p9, %p673_p8 }
  0x54   :  { %p676_p11 = pnand %p675_p10, %p669_p7 }
  0x56   :  { %679 = shalt.err (!%p676_p11)
}
  0x57   :  { %36 = dma.hbm_to_vmem [thread:$0]  %s1055_s1, 128, %s34_s23, [#allocation4]  }
  0x58   :  { %s833_s28 = smov [#allocation8]   ;;  %s834_s2 = smov [#allocation11]  }
  0x59   :  { %s55_s21 = sshll.u32 %s833_s28, 4  ;;  %s75_s18 = sshll.u32 %s834_s2, 4  ;;  %s56_s21 = int_to_ptr.vmem [resolvable:$true] %s55_s21  ;;  %s76_s18 = int_to_ptr.vmem [resolvable:$true] %s75_s18 }
  0x5a   :  { %s680_s26 = scalar_lea.hbm %s1057_s3, 16 }
  0x5b   :  { %p681_p12 = scmp.ne.s32.totalorder %s1057_s3, %s680_s26  ;;  %p684_p13 = scmp.lt.u32.totalorder %s680_s26, %s1057_s3 }
  0x5d   :  { %p686_p0 = pnand %p684_p13, %p681_p12 }
  0x5f   :  { %689 = shalt.err (!%p686_p0)
}
  0x60   :  { %s690_s1 = scalar_lea.vmem %s56_s21, 16  ;;  %s694_s23 = scalar_lea.vmem %s56_s21, 32 }
  0x61   :  { %p691_p1 = scmp.ne.s32.totalorder %s56_s21, %s690_s1  ;;  %p695_p2 = scmp.lt.s32.totalorder %s56_s21, %s56_s21 }
  0x62   :  { %p696_p3 = scmp.lt.s32.totalorder %s694_s23, %s690_s1 }
  0x64   :  { %p697_p4 = por %p696_p3, %p695_p2 }
  0x66   :  { %p698_p5 = pnand %p697_p4, %p691_p1 }
  0x68   :  { %701 = shalt.err (!%p698_p5)
}
  0x69   :  { %58 = dma.hbm_to_vmem [thread:$0]  %s1057_s3, 16, %s56_s21, [#allocation7]  }
  0x6a   :  { %s702_s19 = scalar_lea.hbm %s1059_s5, 16 }
  0x6b   :  { %p703_p6 = scmp.ne.s32.totalorder %s1059_s5, %s702_s19  ;;  %p706_p7 = scmp.lt.u32.totalorder %s702_s19, %s1059_s5 }
  0x6d   :  { %p708_p8 = pnand %p706_p7, %p703_p6 }
  0x6f   :  { %711 = shalt.err (!%p708_p8)
}
  0x70   :  { %s712_s8 = scalar_lea.vmem %s76_s18, 16  ;;  %s716_s27 = scalar_lea.vmem %s76_s18, 32 }
  0x71   :  { %p713_p9 = scmp.ne.s32.totalorder %s76_s18, %s712_s8  ;;  %p717_p10 = scmp.lt.s32.totalorder %s76_s18, %s76_s18 }
  0x72   :  { %p718_p11 = scmp.lt.s32.totalorder %s716_s27, %s712_s8 }
  0x74   :  { %p719_p12 = por %p718_p11, %p717_p10 }
  0x76   :  { %p720_p13 = pnand %p719_p12, %p713_p9 }
  0x78   :  { %723 = shalt.err (!%p720_p13)
}
  0x79   :  { %78 = dma.hbm_to_vmem [thread:$0]  %s1059_s5, 16, %s76_s18, [#allocation10]  }
  0x7a   :  { %s835_s21 = smov [#allocation14]   ;;  %s836_s24 = smov [#allocation17]  }
  0x7b   :  { %s97_s2 = sshll.u32 %s835_s21, 4  ;;  %s119_s25 = sshll.u32 %s836_s24, 4  ;;  %s98_s2 = int_to_ptr.vmem [resolvable:$true] %s97_s2  ;;  %s120_s25 = int_to_ptr.vmem [resolvable:$true] %s119_s25 }
  0x7c   :  { %s724_s30 = scalar_lea.hbm %s1061_s7, 16 }
  0x7d   :  { %p725_p0 = scmp.ne.s32.totalorder %s1061_s7, %s724_s30  ;;  %p728_p1 = scmp.lt.u32.totalorder %s724_s30, %s1061_s7 }
  0x7f   :  { %p730_p2 = pnand %p728_p1, %p725_p0 }
  0x81   :  { %733 = shalt.err (!%p730_p2)
}
  0x82   :  { %s734_s5 = scalar_lea.vmem %s98_s2, 16  ;;  %s738_s18 = scalar_lea.vmem %s98_s2, 32 }
  0x83   :  { %p735_p3 = scmp.ne.s32.totalorder %s98_s2, %s734_s5  ;;  %p739_p4 = scmp.lt.s32.totalorder %s98_s2, %s98_s2 }
  0x84   :  { %p740_p5 = scmp.lt.s32.totalorder %s738_s18, %s734_s5 }
  0x86   :  { %p741_p6 = por %p740_p5, %p739_p4 }
  0x88   :  { %p742_p7 = pnand %p741_p6, %p735_p3 }
  0x8a   :  { %745 = shalt.err (!%p742_p7)
}
  0x8b   :  { %100 = dma.hbm_to_vmem [thread:$0]  %s1061_s7, 16, %s98_s2, [#allocation13]  }
  0x8c   :  { %s746_s19 = scalar_lea.hbm %s1063_s9, 16 }
  0x8d   :  { %p747_p8 = scmp.ne.s32.totalorder %s1063_s9, %s746_s19  ;;  %p750_p9 = scmp.lt.u32.totalorder %s746_s19, %s1063_s9 }
  0x8f   :  { %p752_p10 = pnand %p750_p9, %p747_p8 }
  0x91   :  { %755 = shalt.err (!%p752_p10)
}
  0x92   :  { %s756_s8 = scalar_lea.vmem %s120_s25, 16  ;;  %s760_s27 = scalar_lea.vmem %s120_s25, 32 }
  0x93   :  { %p757_p11 = scmp.ne.s32.totalorder %s120_s25, %s756_s8  ;;  %p761_p12 = scmp.lt.s32.totalorder %s120_s25, %s120_s25 }
  0x94   :  { %p762_p13 = scmp.lt.s32.totalorder %s760_s27, %s756_s8 }
  0x96   :  { %p763_p0 = por %p762_p13, %p761_p12 }
  0x98   :  { %p764_p1 = pnand %p763_p0, %p757_p11 }
  0x9a   :  { %767 = shalt.err (!%p764_p1)
}
  0x9b   :  { %122 = dma.hbm_to_vmem [thread:$0]  %s1063_s9, 16, %s120_s25, [#allocation16]  }
  0x9c   :  { %812 = dma.done.wait [#allocation4], 128  }
  0x9d   :  { %813 = vsyncadd [#allocation4], 4294967168 }
  0x9e   :  { %814 = dma.done.wait [#allocation7], 528  }
  0x9f   :  { %815 = vsyncadd [#allocation7], 4294966768 }
  0xa0   :  { %816 = dma.done.wait [#allocation10], 32  }
  0xa1   :  { %817 = vsyncadd [#allocation10], 4294967264 }
  0xa2   :  { %818 = dma.done.wait [#allocation13], 528  }
  0xa3   :  { %819 = vsyncadd [#allocation13], 4294966768 }
  0xa4   :  { %820 = dma.done.wait [#allocation16], 528  }
  0xa5   :  { %821 = vsyncadd [#allocation16], 4294966768  ;;  %v837_v0 = vmov 0.0|0.0   ;;  %vm838_vm0 = vmmov 0   ;;  %v839_v1 = vmov 0.0   ;;  %v151_v2 = vld [vmem:[#allocation6] sm:$0xff]  ;;  %v439_v46 = vstv %s1054_s0 }
  0xa6   :  { %530 = vmatprep.subr.bf16.mxu0 %v837_v0  ;;  %505 = vmatprep.mubr.msk.f32.mxu0 %vm838_vm0, %v839_v1  ;;  %v152_v3 = vld [vmem:[#allocation6 + $0x8] sm:$0xff]  ;;  %v153_v4 = vld [vmem:[#allocation6 + $0x10] sm:$0xff]  ;;  %v154_v6 = vld [vmem:[#allocation6 + $0x18] sm:$0xff]  ;;  %vm162_vm1 = vcmask 261120   ;;  %s840_s21 = smov [#allocation19]   ;;  %440 = vst [vmem:[#allocation19] sm:$0xff] %v439_v46 }
  0xa7   :  { %536 = vmatprep.subr.bf16.mxu1 %v837_v0  ;;  %516 = vmatprep.mubr.msk.f32.mxu1 %vm838_vm0, %v839_v1  ;;  %v531_v5 = vpack.c.bf16 %v152_v3, %v151_v2  ;;  %v534_v7 = vpack.c.bf16 %v154_v6, %v153_v4  ;;  %v150_v8 = vld [vmem:[#allocation3] sm:$0xff]  ;;  %v474_v9 = vld [vmem:[#allocation8] ss:$0 sm:$0xff]  ;;  %v267_v19 = vld [vmem:[#allocation12] sm:$0xff]  ;;  %s457_s2 = sshll.u32 %s840_s21, 4  ;;  %s458_s2 = int_to_ptr.vmem [resolvable:$true] %s457_s2 }
  0xa8   :  { %v268_v20 = vld [vmem:[#allocation12 + $0x8] sm:$0xff]  ;;  %v269_v21 = vld [vmem:[#allocation12 + $0x10] sm:$0xff]  ;;  %v270_v23 = vld [vmem:[#allocation12 + $0x18] sm:$0xff]  ;;  %s768_s24 = scalar_lea.vmem %s458_s2, 128  ;;  %p773_p3 = scmp.lt.s32.totalorder %s458_s2, %s458_s2 }
  0xa9   :  { %532 = vmatpush3.bf16.msra.mxu0 %v531_v5  ;;  %v537_v22 = vpack.c.bf16 %v268_v20, %v267_v19  ;;  %v540_v24 = vpack.c.bf16 %v270_v23, %v269_v21  ;;  %v352_v25 = vld [vmem:[#allocation15] sm:$0xff]  ;;  %v353_v26 = vld [vmem:[#allocation15 + $0x8] sm:$0xff]  ;;  %v476_v32 = vld [vmem:[#allocation9] ss:$0 sm:$0xff]  ;;  %p769_p2 = scmp.ne.s32.totalorder %s458_s2, %s768_s24  ;;  %p774_p4 = scmp.lt.s32.totalorder %s768_s24, %s768_s24 }
  0xaa   :  { %533 = vmatprep.subr.bf16.mxu0 %v837_v0  ;;  %v543_v27 = vpack.c.bf16 %v353_v26, %v352_v25  ;;  %v477_v34 = vld [vmem:[#allocation11] ss:$0 sm:$0xff]  ;;  %v354_v38 = vld [vmem:[#allocation15 + $0x10] sm:$0xff]  ;;  %v478_v41 = vld [vmem:[#allocation14] ss:$0 sm:$0xff] }
  0xab   :  { %538 = vmatpush3.bf16.msra.mxu1 %v537_v22  ;;  %v355_v39 = vld [vmem:[#allocation15 + $0x18] sm:$0xff]  ;;  %p775_p5 = por %p774_p4, %p773_p3 }
  0xac   :  { %539 = vmatprep.subr.bf16.mxu1 %v837_v0  ;;  %v546_v40 = vpack.c.bf16 %v355_v39, %v354_v38 }
  0xad   :  { %535 = vmatpush3.bf16.msra.mxu0 %v534_v7  ;;  %p776_p6 = pnand %p775_p5, %p769_p2 }
  0xae   :  { %542 = vmatprep.subr.bf16.mxu0 %v837_v0 }
  0xaf   :  { %541 = vmatpush3.bf16.msra.mxu1 %v540_v24 }
  0xb0   :  { %506 = vmatmul.mubr.msk.f32.vlgmr.msra.gmra.mrb[0].mxu0 %vm162_vm1, %v150_v8 }
  0xb1   :  { %527 = vmatprep.mubr.msk.f32.mxu0 %vm838_vm0, %v839_v1  ;;  %544 = vmatpush3.bf16.msra.mxu0 %v543_v27 }
  0xb2   :  { %545 = vmatprep.subr.bf16.mxu0 %v837_v0 }
  0xb5   :  { %547 = vmatpush3.bf16.msra.mxu0 %v546_v40 }
 0x183   :  { %v232_v10 = vpop.f32.mrb[0].mxu0 }
 0x184   :  { %v233_v11 = vadd.f32 %v474_v9, %v232_v10  ;;  %v507_v12 = vpop.f32.mrb[1].mxu0 }
 0x186   :  { %v236_v13 = vsel %vm162_vm1, %v233_v11, 0.0 }
 0x187   :  { %237 = vadd.xlane.f32.xlu0 %v236_v13 }
 0x214   :  { %v238_v14 = vpop.xlane.xlu0 %237 }
 0x215   :  { %v240_v15 = vmul.f32 0.03125, %v238_v14 }
 0x217   :  { %v241_v16 = vsub.f32 %v233_v11, %v240_v15 }
 0x219   :  { %v242_v17 = vmul.f32 %v241_v16, %v241_v16 }
 0x21b   :  { %v243_v18 = vsel %vm162_vm1, %v242_v17, 0.0 }
 0x21c   :  { %244 = vadd.xlane.f32.xlu0 %v243_v18 }
 0x2a9   :  { %v245_v28 = vpop.xlane.xlu0 %244 }
 0x2aa   :  { %v246_v29 = vmul.f32 0.03125, %v245_v28 }
 0x2ac   :  { %v247_v30 = vadd.f32 1e-05, %v246_v29 }
 0x2ae   :  { %564 = vrsqrt.f32 %v247_v30 }
 0x2b8   :  { %v565_v31 = vpop.eup %564 }
 0x2b9   :  { %v249_v33 = vmul.f32 %v565_v31, %v241_v16 }
 0x2bb   :  { %v257_v35 = vmul.f32 %v476_v32, %v249_v33 }
 0x2bd   :  { %v265_v36 = vadd.f32 %v477_v34, %v257_v35 }
 0x2bf   :  { %566 = vtanh.f32 %v265_v36 }
 0x2c9   :  { %v567_v37 = vpop.eup %566 }
 0x2ca   :  { %517 = vmatmul.mubr.msk.f32.vlgmr.msra.gmra.mrb[0].mxu1 %vm162_vm1, %v567_v37 }
 0x39d   :  { %v347_v42 = vpop.f32.mrb[0].mxu1 }
 0x39e   :  { %v348_v43 = vadd.f32 %v478_v41, %v347_v42  ;;  %v518_v44 = vpop.f32.mrb[1].mxu1 }
 0x3a0   :  { %v351_v45 = vmax.f32 %v348_v43, 0.0 }
 0x3a2   :  { %528 = vmatmul.mubr.msk.f32.vlgmr.msra.gmra.mrb[2].mxu0 %vm162_vm1, %v351_v45 }
 0x3a3   :  { %779 = shalt.err (!%p776_p6)
}
 0x3a4   :  { %s780_s29 = scalar_lea.hbm %s1065_s11, 128 }
 0x3a5   :  { %p781_p7 = scmp.ne.s32.totalorder %s1065_s11, %s780_s29  ;;  %p784_p8 = scmp.lt.u32.totalorder %s780_s29, %s1065_s11 }
 0x3a7   :  { %p786_p9 = pnand %p784_p8, %p781_p7 }
 0x3a9   :  { %789 = shalt.err (!%p786_p9)
}
 0x3aa   :  { %460 = dma.vmem_to_hbm [thread:$0]  %s458_s2, 128, %s1065_s11, [#allocation20]   ;;  %v480_v47 = vld [vmem:[#allocation17] ss:$0 sm:$0xff] }
 0x3ab   :  { %s841_s5 = smov [#allocation18]  }
 0x3ac   :  { %s447_s18 = sshll.u32 %s841_s5, 4  ;;  %s448_s18 = int_to_ptr.vmem [resolvable:$true] %s447_s18 }
 0x3ad   :  { %s790_s12 = scalar_lea.vmem %s448_s18, 128  ;;  %p795_p11 = scmp.lt.s32.totalorder %s448_s18, %s448_s18 }
 0x3ae   :  { %p791_p10 = scmp.ne.s32.totalorder %s448_s18, %s790_s12  ;;  %p796_p12 = scmp.lt.s32.totalorder %s790_s12, %s790_s12 }
 0x3b0   :  { %p797_p13 = por %p796_p12, %p795_p11 }
 0x3b2   :  { %p798_p0 = pnand %p797_p13, %p791_p10 }
 0x475   :  { %v432_v48 = vpop.f32.mrb[2].mxu0 }
 0x476   :  { %v433_v49 = vadd.f32 %v480_v47, %v432_v48  ;;  %v529_v50 = vpop.f32.mrb[3].mxu0 }
 0x478   :  { %568 = vtanh.f32 %v433_v49 }
 0x482   :  { %v569_v51 = vpop.eup %568 }
 0x483   :  { %437 = vst [vmem:[#allocation18] sm:$0xff] %v569_v51 }
 0x484   :  { %801 = shalt.err (!%p798_p0)
}
 0x485   :  { %s802_s11 = scalar_lea.hbm %s1064_s10, 128 }
 0x486   :  { %p803_p1 = scmp.ne.s32.totalorder %s1064_s10, %s802_s11  ;;  %p806_p2 = scmp.lt.u32.totalorder %s802_s11, %s1064_s10 }
 0x488   :  { %p808_p3 = pnand %p806_p2, %p803_p1 }
 0x48a   :  { %811 = shalt.err (!%p808_p3)
}
 0x48b   :  { %450 = dma.vmem_to_hbm [thread:$0]  %s448_s18, 128, %s1064_s10, [#allocation5]  }
 0x48c   :  { %822 = dma.done.wait [#allocation5], 128  }
 0x48d   :  { %823 = vsyncadd [#allocation5], 4294967168 }
 0x48e   :  { %824 = dma.done.wait [#allocation20], 128  }
 0x48f   :  { %825 = vsyncadd [#allocation20], 4294967168 }
 0x490   :  { %467 = vsyncpa [#allocation4], 1 }
 0x491   :  { %468 = vsyncpa [#allocation7], 1 }
 0x492   :  { %469 = vsyncpa [#allocation10], 1 }
 0x493   :  { %470 = vsyncpa [#allocation13], 1 }
 0x494   :  { %471 = vsyncpa [#allocation16], 1 }
 0x495   :  { %472 = vsyncpa [#allocation5], 1 }
 0x496   :  { %473 = vsyncpa [#allocation20], 1 }

</bundles_post_ra>
